<compile_context>
chip_gen: v5e
topology: v5e:2x2
jax: 0.10.0
libtpu: 0.0.40
codegen_flags: <defaults>
</compile_context>

<pallas_src>
import functools

import jax
import jax.numpy as jnp
from jax.experimental import pallas as pl
from jax.experimental.pallas import tpu as pltpu

LANE = 128          # lane width  (last dim)
SUBLANE_BF16 = 16   # sublane granularity for bf16-packed rows


def _round_up(x, m):
    return ((x + m - 1) // m) * m


@functools.lru_cache(maxsize=None)
def _vmem_info():
    """(vmem_capacity_bytes, tiling_budget_bytes), generation-aware."""
    cap = 64 << 20                          # conservative default (v7x per-core VMEM)
    try:
        info = pltpu.get_tpu_info()
        cap = int(getattr(info, "vmem_capacity_bytes", cap))
    except Exception:
        pass
    # Leave headroom for Mosaic internal scratch / pipeline slack:
    #   v7x (64 MiB)    -> ~54 MiB tiling budget
    #   v5e/v6e (128 M) -> ~108 MiB tiling budget
    budget = max(min(cap - (8 << 20), int(cap * 0.85)), 16 << 20)
    return cap, budget


def _resident_spec(shape):
    """BlockSpec for a grid-invariant operand: single-buffered when supported."""
    idx = lambda i: (0, 0)
    try:
        return pl.BlockSpec(shape, idx, pipeline_mode=pl.Buffered(1))
    except Exception:
        return pl.BlockSpec(shape, idx)


# ------------------------------- kernels ------------------------------------

def _mlp_kernel_resident(x_ref, w1_ref, b1_ref, w2_ref, b2_ref, o_ref):
    # Layer 1: Linear + ReLU (bf16 operands, f32 MXU accumulation, f32 bias).
    h = jnp.dot(x_ref[...], w1_ref[...], preferred_element_type=jnp.float32)
    h = jnp.maximum(h + b1_ref[...], 0.0).astype(w2_ref.dtype)   # bf16 live intermediate
    # Layer 2: Linear.
    out = jnp.dot(h, w2_ref[...], preferred_element_type=jnp.float32)
    o_ref[...] = (out + b2_ref[...]).astype(o_ref.dtype)


def _mlp_kernel_ktiled(x_ref, w1_ref, b1_ref, w2_ref, b2_ref, o_ref, acc_ref):
    # The hidden dim is tiled over grid axis 1; ReLU is elementwise over hidden
    # units, so sum_k relu(x @ w1[:, k] + b1[k]) @ w2[k, :] is exact.
    k = pl.program_id(1)

    @pl.when(k == 0)
    def _init():
        acc_ref[...] = jnp.zeros_like(acc_ref)

    h = jnp.dot(x_ref[...], w1_ref[...], preferred_element_type=jnp.float32)
    h = jnp.maximum(h + b1_ref[...], 0.0).astype(w2_ref.dtype)
    acc_ref[...] += jnp.dot(h, w2_ref[...], preferred_element_type=jnp.float32)

    @pl.when(k == pl.num_programs(1) - 1)
    def _finalize():
        o_ref[...] = (acc_ref[...] + b2_ref[...]).astype(o_ref.dtype)


# ------------------------------- wrapper -------------------------------------

@functools.partial(jax.jit, static_argnames=("dims", "tile_n", "out_dtype"))
def _mlp_forward_padded(x, w1p, b1p, w2p, b2p, *, dims, tile_n, out_dtype):
    d_in, d_hid, emb = dims
    N = x.shape[0]
    assert x.shape[1] == d_in, (x.shape, dims)
    d_in_p, d_hid_p = w1p.shape
    emb_p = w2p.shape[1]
    cdt = w1p.dtype
    odt = jnp.dtype(x.dtype if out_dtype is None else out_dtype)
    cbytes = jnp.dtype(cdt).itemsize
    obytes = odt.itemsize

    cap, budget = _vmem_info()

    # ---------- VMEM accounting (bytes) ----------
    wres_bytes = ((d_in_p * d_hid_p + d_hid_p * emb_p) * cbytes
                  + (d_hid_p + emb_p) * 4)

    def vmem_resident(tn):
        return (2 * tn * d_in_p * cbytes          # x tile, double-buffered
                + wres_bytes                       # weights/biases, single-buffered
                + 2 * tn * emb_p * obytes          # out tile, double-buffered
                + tn * d_hid_p * 4)                # f32 hidden intermediate

    def vmem_ktiled(tn, tk):
        return (2 * tn * d_in_p * cbytes
                + 2 * (d_in_p * tk + tk * emb_p) * cbytes   # streamed weight chunks
                + 2 * (tk + emb_p) * 4                      # bias chunks
                + 2 * tn * emb_p * obytes
                + tn * emb_p * 4                             # f32 accumulator scratch
                + tn * tk * 4)                               # f32 hidden chunk

    # ---------- choose the row tile (MXU-friendly) ----------
    if N <= 128:
        cands = [_round_up(max(N, 1), SUBLANE_BF16)]
    else:
        hi = min(_round_up(int(tile_n), 256), _round_up(N, 256), 1024)
        cands = [t for t in (1024, 768, 512, 256, 128) if t <= hi] or [128]

    tn = None
    for t in cands:
        if vmem_resident(t) <= budget:
            tn = t
            break
    if tn is not None and N > 128 and pl.cdiv(N, tn) == 1:
        # Prefer >= 2 grid steps so both v7x TensorCores get work (free elsewhere).
        for t in cands:
            if t < tn and pl.cdiv(N, t) >= 2 and vmem_resident(t) <= budget:
                tn = t
                break

    if tn is not None:
        k_tiles, tk = 1, d_hid_p
    else:
        # Weights alone exceed the budget: stream them in d_hid chunks instead.
        tn = cands[-1]
        m = d_hid_p // LANE
        tk = LANE
        for div in range(m, 0, -1):   # largest 128-multiple divisor of d_hid_p that fits
            if m % div == 0 and vmem_ktiled(tn, div * LANE) <= budget:
                tk = div * LANE
                break
        k_tiles = d_hid_p // tk

    n_p = _round_up(max(N, 1), tn)
    n_tiles = n_p // tn

    # ---------- pad the activations only when needed ----------
    xp = x.astype(cdt)
    if n_p != N or d_in_p != d_in:
        xp = jnp.pad(xp, ((0, n_p - N), (0, d_in_p - d_in)))

    cost = pl.CostEstimate(
        flops=2 * N * d_in * d_hid + 2 * N * d_hid * emb,
        transcendentals=0,
        bytes_accessed=int(xp.size * cbytes
                           + (w1p.size + w2p.size) * cbytes
                             * (n_tiles if k_tiles > 1 else 1)
                           + (b1p.size + b2p.size) * 4
                           + n_p * emb_p * obytes),
    )
    vmem_limit = int(max(16 << 20, min(budget + (4 << 20), cap - (2 << 20))))

    if k_tiles == 1:
        grid_spec = pltpu.PrefetchScalarGridSpec(
            num_scalar_prefetch=0,
            grid=(n_tiles,),
            in_specs=[
                pl.BlockSpec((tn, d_in_p), lambda i: (i, 0)),     # x: tiled over rows
                _resident_spec((d_in_p, d_hid_p)),                # w1: resident
                _resident_spec((1, d_hid_p)),                     # b1: resident
                _resident_spec((d_hid_p, emb_p)),                 # w2: resident
                _resident_spec((1, emb_p)),                       # b2: resident
            ],
            out_specs=pl.BlockSpec((tn, emb_p), lambda i: (i, 0)),
            scratch_shapes=[],
        )
        kernel = _mlp_kernel_resident
        dim_sem = ("parallel",)
    else:
        grid_spec = pltpu.PrefetchScalarGridSpec(
            num_scalar_prefetch=0,
            grid=(n_tiles, k_tiles),
            in_specs=[
                pl.BlockSpec((tn, d_in_p), lambda i, k: (i, 0)),  # x row tile (held over k)
                pl.BlockSpec((d_in_p, tk), lambda i, k: (0, k)),  # w1 column chunk
                pl.BlockSpec((1, tk), lambda i, k: (0, k)),       # b1 chunk
                pl.BlockSpec((tk, emb_p), lambda i, k: (k, 0)),   # w2 row chunk
                pl.BlockSpec((1, emb_p), lambda i, k: (0, 0)),    # b2
            ],
            out_specs=pl.BlockSpec((tn, emb_p), lambda i, k: (i, 0)),
            scratch_shapes=[pltpu.VMEM((tn, emb_p), jnp.float32)],
        )
        kernel = _mlp_kernel_ktiled
        dim_sem = ("parallel", "arbitrary")

    out_p = pl.pallas_call(
        kernel,
        out_shape=jax.ShapeDtypeStruct((n_p, emb_p), odt),
        grid_spec=grid_spec,
        compiler_params=pltpu.CompilerParams(
            dimension_semantics=dim_sem,
            vmem_limit_bytes=vmem_limit,
        ),
        cost_estimate=cost,
    )(xp, w1p, b1p, w2p, b2p)

    return out_p[:N, :emb]


def prepare_mlp_params(w1, b1, w2, b2, compute_dtype=jnp.bfloat16):
    """Pad feature dims to the 128-lane grid and cast weights to the MXU compute
    dtype ONCE (hoisted out of the per-call path).  Weights are stored (in, out),
    i.e. the transpose of PyTorch's nn.Linear (out, in), so the kernel computes
    x @ W + b."""
    w1 = jnp.asarray(w1); b1 = jnp.asarray(b1)
    w2 = jnp.asarray(w2); b2 = jnp.asarray(b2)
    d_in, d_hid = w1.shape
    emb = w2.shape[1]
    d_in_p, d_hid_p, emb_p = (_round_up(d, LANE) for d in (d_in, d_hid, emb))
    w1p = jnp.pad(w1.astype(compute_dtype),
                  ((0, d_in_p - d_in), (0, d_hid_p - d_hid)))
    w2p = jnp.pad(w2.astype(compute_dtype),
                  ((0, d_hid_p - d_hid), (0, emb_p - emb)))
    b1p = jnp.pad(b1.reshape(1, -1).astype(jnp.float32),
                  ((0, 0), (0, d_hid_p - d_hid)))
    b2p = jnp.pad(b2.reshape(1, -1).astype(jnp.float32),
                  ((0, 0), (0, emb_p - emb)))
    return (w1p, b1p, w2p, b2p, (int(d_in), int(d_hid), int(emb)))


def mlp_forward(x, params, *, tile_n=512, out_dtype=None):
    """Fused Linear -> ReLU -> Linear forward.  `params` comes from
    prepare_mlp_params.  Pass out_dtype=jnp.bfloat16 to halve output HBM/VMEM
    traffic when downstream consumers accept bf16."""
    w1p, b1p, w2p, b2p, dims = params
    _vmem_info()  # warm the cached hardware query outside of tracing
    return _mlp_forward_padded(x, w1p, b1p, w2p, b2p, dims=dims,
                               tile_n=int(tile_n), out_dtype=out_dtype)


def init_mlp_params(key, d_dim, embedding_dim):
    """Deterministic init mimicking nn.Linear's uniform(-1/sqrt(fan_in), 1/sqrt(fan_in)).

    Returned weights are (in, out) -- the transpose of PyTorch's (out, in).
    Master params stay in f32; prepare_mlp_params casts matmul operands to bf16."""
    k1, k2, k3, k4 = jax.random.split(key, 4)
    bound = 1.0 / jnp.sqrt(d_dim)
    w1 = jax.random.uniform(k1, (d_dim, d_dim), jnp.float32, -bound, bound)
    b1 = jax.random.uniform(k2, (1, d_dim), jnp.float32, -bound, bound)
    w2 = jax.random.uniform(k3, (d_dim, embedding_dim), jnp.float32, -bound, bound)
    b2 = jax.random.uniform(k4, (1, embedding_dim), jnp.float32, -bound, bound)
    return w1, b1, w2, b2


if __name__ == "__main__":
    # Small shapes consistent with the module: batch=8, d_dim=32, embedding_dim=16
    # (n_layers=2, ReLU activation).
    N, d_dim, embedding_dim = 8, 32, 16

    key = jax.random.PRNGKey(0)
    kx, kp = jax.random.split(key)
    x = jax.random.normal(kx, (N, d_dim), dtype=jnp.float32)
    w1, b1, w2, b2 = init_mlp_params(kp, d_dim, embedding_dim)

    params = prepare_mlp_params(w1, b1, w2, b2)   # pad + bf16-cast once (hoisted)
    out = jax.block_until_ready(mlp_forward(x, params))
    assert out.shape == (N, embedding_dim), out.shape

    # Mixed-precision reference (same bf16 operand cast, f32 accumulation).
    xb, w1b, w2b = (a.astype(jnp.bfloat16) for a in (x, w1, w2))
    h = jnp.maximum(jnp.dot(xb, w1b, preferred_element_type=jnp.float32)
                    + b1.astype(jnp.float32), 0.0)
    ref = (jnp.dot(h.astype(jnp.bfloat16), w2b, preferred_element_type=jnp.float32)
           + b2.astype(jnp.float32)).astype(x.dtype)
    assert jnp.allclose(out, ref, atol=2e-3, rtol=2e-3), \
        float(jnp.max(jnp.abs(out - ref)))

    # Loose sanity check vs. the full-f32 reference (bf16 matmul operands).
    ref32 = jnp.maximum(x @ w1 + b1, 0.0) @ w2 + b2
    assert jnp.allclose(out, ref32, atol=5e-2, rtol=5e-2)

    print("KERNEL_OK")
</pallas_src>

<mosaic_0001>
module attributes {stable_mosaic.version = 11 : i64} {
  func.func @_mlp_kernel_resident(%arg0: i32, %arg1: memref<16x128xbf16, #tpu.memory_space<vmem>>, %arg2: memref<128x128xbf16, #tpu.memory_space<vmem>>, %arg3: memref<1x128xf32, #tpu.memory_space<vmem>>, %arg4: memref<128x128xbf16, #tpu.memory_space<vmem>>, %arg5: memref<1x128xf32, #tpu.memory_space<vmem>>, %arg6: memref<16x128xf32, #tpu.memory_space<vmem>>) attributes {dimension_semantics = [#tpu.dimension_semantics<parallel>], iteration_bounds = array<i64: 1>, scalar_prefetch = 0 : i64, scratch_operands = 0 : i64, tpu.core_type = #tpu.core_type<tc>, window_params = [{transform_indices = @transform_0, window_bounds = array<i64: 16, 128>}, {pipeline_mode = #tpu.pipeline_mode<synchronous>, transform_indices = @transform_1, window_bounds = array<i64: 128, 128>}, {pipeline_mode = #tpu.pipeline_mode<synchronous>, transform_indices = @transform_2, window_bounds = array<i64: 1, 128>}, {pipeline_mode = #tpu.pipeline_mode<synchronous>, transform_indices = @transform_3, window_bounds = array<i64: 128, 128>}, {pipeline_mode = #tpu.pipeline_mode<synchronous>, transform_indices = @transform_4, window_bounds = array<i64: 1, 128>}, {transform_indices = @transform_5, window_bounds = array<i64: 16, 128>}]} {
    %c0 = arith.constant 0 : index
    %c0_0 = arith.constant 0 : index
    %0 = vector.load %arg1[%c0, %c0_0] : memref<16x128xbf16, #tpu.memory_space<vmem>>, vector<16x128xbf16>
    %c0_1 = arith.constant 0 : index
    %c0_2 = arith.constant 0 : index
    %1 = vector.load %arg2[%c0_1, %c0_2] : memref<128x128xbf16, #tpu.memory_space<vmem>>, vector<128x128xbf16>
    %cst = arith.constant dense<0.000000e+00> : vector<16x128xf32>
    %2 = tpu.matmul %0, %1, %cst {dimension_numbers = #tpu.dot_dimension_numbers<[1], [0], [0], [1], [0, 0, 1, 1], [], []>} : vector<16x128xbf16>, vector<128x128xbf16>, vector<16x128xf32> -> vector<16x128xf32>
    %c0_3 = arith.constant 0 : index
    %c0_4 = arith.constant 0 : index
    %3 = vector.load %arg3[%c0_3, %c0_4] : memref<1x128xf32, #tpu.memory_space<vmem>>, vector<1x128xf32>
    %4 = vector.broadcast %3 : vector<1x128xf32> to vector<16x128xf32>
    %5 = arith.addf %2, %4 : vector<16x128xf32>
    %cst_5 = arith.constant 0.000000e+00 : f32
    %6 = vector.broadcast %cst_5 : f32 to vector<16x128xf32>
    %7 = arith.maximumf %5, %6 : vector<16x128xf32>
    %8 = arith.truncf %7 : vector<16x128xf32> to vector<16x128xbf16>
    %c0_6 = arith.constant 0 : index
    %c0_7 = arith.constant 0 : index
    %9 = vector.load %arg4[%c0_6, %c0_7] : memref<128x128xbf16, #tpu.memory_space<vmem>>, vector<128x128xbf16>
    %cst_8 = arith.constant dense<0.000000e+00> : vector<16x128xf32>
    %10 = tpu.matmul %8, %9, %cst_8 {dimension_numbers = #tpu.dot_dimension_numbers<[1], [0], [0], [1], [0, 0, 1, 1], [], []>} : vector<16x128xbf16>, vector<128x128xbf16>, vector<16x128xf32> -> vector<16x128xf32>
    %c0_9 = arith.constant 0 : index
    %c0_10 = arith.constant 0 : index
    %11 = vector.load %arg5[%c0_9, %c0_10] : memref<1x128xf32, #tpu.memory_space<vmem>>, vector<1x128xf32>
    %12 = vector.broadcast %11 : vector<1x128xf32> to vector<16x128xf32>
    %13 = arith.addf %10, %12 : vector<16x128xf32>
    %c0_11 = arith.constant 0 : index
    %c0_12 = arith.constant 0 : index
    %14 = vector.load %arg6[%c0_11, %c0_12] : memref<16x128xf32, #tpu.memory_space<vmem>>, vector<16x128xf32>
    tpu.vector_store %arg6[%c0_11, %c0_12], %13 {strides = array<i32>} : memref<16x128xf32, #tpu.memory_space<vmem>>, vector<16x128xf32>,
    return
  }
  func.func @transform_0(%arg0: i32) -> (i32, i32) {
    %c0_i32 = arith.constant 0 : i32
    %c0_i32_0 = arith.constant 0 : i32
    return %arg0, %c0_i32 : i32, i32
  }
  func.func @transform_1(%arg0: i32) -> (i32, i32) {
    %c0_i32 = arith.constant 0 : i32
    %c0_i32_0 = arith.constant 0 : i32
    %c0_i32_1 = arith.constant 0 : i32
    return %c0_i32, %c0_i32_0 : i32, i32
  }
  func.func @transform_2(%arg0: i32) -> (i32, i32) {
    %c0_i32 = arith.constant 0 : i32
    %c0_i32_0 = arith.constant 0 : i32
    %c0_i32_1 = arith.constant 0 : i32
    return %c0_i32, %c0_i32_0 : i32, i32
  }
  func.func @transform_3(%arg0: i32) -> (i32, i32) {
    %c0_i32 = arith.constant 0 : i32
    %c0_i32_0 = arith.constant 0 : i32
    %c0_i32_1 = arith.constant 0 : i32
    return %c0_i32, %c0_i32_0 : i32, i32
  }
  func.func @transform_4(%arg0: i32) -> (i32, i32) {
    %c0_i32 = arith.constant 0 : i32
    %c0_i32_0 = arith.constant 0 : i32
    %c0_i32_1 = arith.constant 0 : i32
    return %c0_i32, %c0_i32_0 : i32, i32
  }
  func.func @transform_5(%arg0: i32) -> (i32, i32) {
    %c0_i32 = arith.constant 0 : i32
    %c0_i32_0 = arith.constant 0 : i32
    return %arg0, %c0_i32 : i32, i32
  }
}

</mosaic_0001>

<bundles_post_ra>
// kernel: _mlp_forward_padded.1
= control target key start
LH: loop header
LB: loop body
LE: loop exit
PB: predicated region body
PF: predicated region fallthrough
CT: control target
= control target key end

     0   :  { %10 = vsyncpa [#allocation3], 0  ;;  %s433_s0 = inlined_call_operand.vmem [shape: bf16[16,128], index: 0, kind: input, shape index: {}]   ;;  %s434_s1 = inlined_call_operand.hbm [shape: bf16[128,128], index: 1, kind: input, shape index: {}]   ;;  %s435_s2 = inlined_call_operand.vmem [shape: f32[1,128], index: 2, kind: input, shape index: {}]   ;;  %s436_s3 = inlined_call_operand.hbm [shape: bf16[128,128], index: 3, kind: input, shape index: {}]   ;;  %s437_s4 = inlined_call_operand.vmem [shape: f32[1,128], index: 4, kind: input, shape index: {}]   ;;  %s438_s5 = inlined_call_operand.vmem [shape: f32[16,128], index: 5, kind: output, shape index: {}]  }
   0x1   :  { %s18_s20 = sshll.u32 %s434_s1, 4  ;;  %s19_s20 = int_to_ptr.hbm [resolvable:$true] %s18_s20 }
   0x2   :  { %11 = vsyncpa [#allocation5], 0  ;;  %s378_s21 = smov [#allocation2]   ;;  %s33_s25 = sshll.u32 %s436_s3, 4  ;;  %s34_s25 = int_to_ptr.hbm [resolvable:$true] %s33_s25 }
   0x3   :  { %s20_s22 = sshll.u32 %s378_s21, 4  ;;  %s379_s26 = smov 64   ;;  %s21_s22 = int_to_ptr.vmem [resolvable:$true] %s20_s22 }
   0x4   :  { %s380_s27 = smov 4   ;;  %s381_s28 = smov [#allocation4]  }
   0x5   :  { %26 = dma.hbm_to_vmem [thread:$0]  %s19_s20, 1024, %s21_s22, [#allocation3], %s379_s26, %s379_s26, %s380_s27  }
   0x6   :  { %s35_s29 = sshll.u32 %s381_s28, 4  ;;  %s36_s29 = int_to_ptr.vmem [resolvable:$true] %s35_s29 }
   0x7   :  { %41 = dma.hbm_to_vmem [thread:$0]  %s34_s25, 1024, %s36_s29, [#allocation5], %s379_s26, %s379_s26, %s380_s27  }
   0x8   :  { %374 = dma.done.wait [#allocation3], 1024  }
   0x9   :  { %375 = vsyncadd [#allocation3], 4294966272 }
   0xa   :  { %376 = dma.done.wait [#allocation5], 1024  }
   0xb   :  { %377 = vsyncadd [#allocation5], 4294966272  ;;  %v311_v0 = vld [vmem:[#allocation2 + $0x38] sm:$0xff]  ;;  %v310_v1 = vld [vmem:[#allocation2 + $0x30] sm:$0xff] }
   0xc   :  { %128 = vmatpush.bf16.msra.mxu0 %v311_v0  ;;  %v319_v2 = vld [vmem:[#allocation4 + $0x38] sm:$0xff]  ;;  %v318_v3 = vld [vmem:[#allocation4 + $0x30] sm:$0xff]  ;;  %v309_v4 = vld [vmem:[#allocation2 + $0x28] sm:$0xff] }
   0xd   :  { %213 = vmatpush.bf16.msra.mxu1 %v319_v2  ;;  %v317_v5 = vld [vmem:[#allocation4 + $0x28] sm:$0xff]  ;;  %v308_v6 = vld [vmem:[#allocation2 + $0x20] sm:$0xff]  ;;  %v307_v8 = vld [vmem:[#allocation2 + $0x18] sm:$0xff] }
   0xe   :  { %v316_v7 = vld [vmem:[#allocation4 + $0x20] sm:$0xff]  ;;  %v306_v9 = vld [vmem:[#allocation2 + $0x10] sm:$0xff]  ;;  %v305_v10 = vld [vmem:[#allocation2 + $0x8] sm:$0xff] }
   0xf   :  { %v304_v11 = vld [vmem:[#allocation2] sm:$0xff]  ;;  %v315_v13 = vld [vmem:[#allocation4 + $0x18] sm:$0xff]  ;;  %v314_v14 = vld [vmem:[#allocation4 + $0x10] sm:$0xff] }
  0x10   :  { %129 = vmatpush.bf16.msra.mxu0 %v310_v1  ;;  %v303_v12 = vld [vmem:[%s433_s0] sm:$0xff]  ;;  %v313_v15 = vld [vmem:[#allocation4 + $0x8] sm:$0xff] }
  0x11   :  { %214 = vmatpush.bf16.msra.mxu1 %v318_v3  ;;  %v312_v16 = vld [vmem:[#allocation4] sm:$0xff] }
  0x12   :  { %v324_v18 = vld [vmem:[%s435_s2] ss:$0 sm:$0xff] }
  0x13   :  { %v325_v25 = vld [vmem:[%s437_s4] ss:$0 sm:$0xff] }
  0x14   :  { %130 = vmatpush.bf16.msra.mxu0 %v309_v4 }
  0x15   :  { %215 = vmatpush.bf16.msra.mxu1 %v317_v5 }
  0x18   :  { %131 = vmatpush.bf16.msra.mxu0 %v308_v6 }
  0x19   :  { %216 = vmatpush.bf16.msra.mxu1 %v316_v7 }
  0x1c   :  { %132 = vmatpush.bf16.msra.mxu0 %v307_v8 }
  0x1d   :  { %217 = vmatpush.bf16.msra.mxu1 %v315_v13 }
  0x20   :  { %133 = vmatpush.bf16.msra.mxu0 %v306_v9 }
  0x21   :  { %218 = vmatpush.bf16.msra.mxu1 %v314_v14 }
  0x24   :  { %134 = vmatpush.bf16.msra.mxu0 %v305_v10 }
  0x25   :  { %219 = vmatpush.bf16.msra.mxu1 %v313_v15 }
  0x28   :  { %135 = vmatpush.bf16.msra.mxu0 %v304_v11 }
  0x29   :  { %220 = vmatpush.bf16.msra.mxu1 %v312_v16 }
  0x2b   :  { %136 = vmatmul.bf16.vlgmr.msra.gmra.mxu0 %v303_v12 }
  0xa8   :  { %v137_v17 = vpop.f32.mrf.mxu0 }
  0xa9   :  { %v138_v19 = vadd.f32 %v324_v18, %v137_v17 }
  0xab   :  { %v142_v22 = vmax.f32 %v138_v19, 0.0 }
  0xb0   :  { %v139_v20 = vpop.f32.mrf.mxu0 }
  0xb1   :  { %v140_v21 = vadd.f32 %v324_v18, %v139_v20 }
  0xb3   :  { %v143_v23 = vmax.f32 %v140_v21, 0.0 }
  0xb5   :  { %v144_v24 = vpack.c.bf16 %v143_v23, %v142_v22 }
  0xb7   :  { %221 = vmatmul.bf16.vlgmr.msra.gmra.mxu1 %v144_v24 }
 0x134   :  { %v222_v26 = vpop.f32.mrf.mxu1 }
 0x135   :  { %v223_v27 = vadd.f32 %v325_v25, %v222_v26 }
 0x137   :  { %227 = vst [vmem:[%s438_s5] sm:$0xff] %v223_v27 }
 0x13c   :  { %v224_v28 = vpop.f32.mrf.mxu1 }
 0x13d   :  { %v225_v29 = vadd.f32 %v325_v25, %v224_v28 }
 0x13f   :  { %228 = vst [vmem:[%s438_s5 + $0x8] sm:$0xff] %v225_v29 }
 0x140   :  { %233 = vsyncpa [#allocation3], 1 }
 0x141   :  { %234 = vsyncpa [#allocation5], 1 }

</bundles_post_ra>
